<compile_context>
chip_gen: v7x
topology: tpu7x:2x2x1
jax: 0.10.0
libtpu: 0.0.40
codegen_flags: <defaults>
</compile_context>

<pallas_src>
import functools

import jax
import jax.numpy as jnp
from jax.experimental import pallas as pl
from jax.experimental.pallas import tpu as pltpu

block_size = 32
n_embd = 64
dropout = 0.0  # p=0.0 -> dropout is an identity


def _attn_kernel(x_ref, wqkv_ref, o_ref, *, scale, head_size, num_heads):
    # x_ref:    (Bblk, T, C)       activations (bf16 by default)
    # wqkv_ref: (C, 3*nh*H)        fused [Wq_0..Wq_{nh-1} | Wk_0.. | Wv_0..], same dtype as x
    # o_ref:    (Bblk, T, nh*H)    attention output (original input dtype)
    Bblk, T, C = x_ref.shape
    H, nh = head_size, num_heads
    cd = x_ref.dtype                       # MXU input dtype (bf16 by default), f32 accumulation

    # ---- Fused QKV projection: ONE (Bblk*T, C) @ (C, 3*nh*H) MXU matmul ----
    x2d = x_ref[...].reshape(Bblk * T, C)                      # clean sublane collapse (T % 8 == 0)
    qkv = jnp.dot(x2d, wqkv_ref[...],
                  preferred_element_type=jnp.float32)          # (Bblk*T, 3*nh*H) f32

    # ---- Causal mask: one 2-D iota compare, broadcast over batch and reused by every head ----
    row = jax.lax.broadcasted_iota(jnp.int32, (T, T), 0)
    col = jax.lax.broadcasted_iota(jnp.int32, (T, T), 1)
    causal = (col <= row)[None, :, :]                          # (1, T, T) bool

    outs = []
    for h in range(nh):                                        # static unroll over fused heads
        q = qkv[:, (0 * nh + h) * H:(0 * nh + h + 1) * H]
        k = qkv[:, (1 * nh + h) * H:(1 * nh + h + 1) * H]
        v = qkv[:, (2 * nh + h) * H:(2 * nh + h + 1) * H]
        # Apply the C**-0.5 scale to q (T*H elems; cheaper than scaling the (T,T) scores).
        q = (q * scale).astype(cd).reshape(Bblk, T, H)
        k = k.astype(cd).reshape(Bblk, T, H)
        v = v.astype(cd).reshape(Bblk, T, H)

        # Attention scores: contract the last axes directly (no explicit k transpose).
        s = jnp.einsum('bqd,bkd->bqk', q, k,
                       preferred_element_type=jnp.float32)     # (Bblk, T, T) f32
        s = jnp.where(causal, s, -jnp.inf)                     # masked_fill(tril == 0, -inf)

        # Numerically stable row softmax; exact division for the denominator.
        s = s - jnp.max(s, axis=-1, keepdims=True)
        p = jnp.exp(s)
        p = p / jnp.sum(p, axis=-1, keepdims=True)
        # dropout(p=0.0) -> identity (no-op).

        outs.append(jnp.einsum('bqk,bkd->bqd', p.astype(cd), v,
                               preferred_element_type=jnp.float32))

    # Assemble the full output slab in-register so the store is lane-dense when nh*H >= 128.
    out = outs[0] if nh == 1 else jnp.concatenate(outs, axis=-1)    # (Bblk, T, nh*H)
    o_ref[...] = out.astype(o_ref.dtype)


def _pick_batch_block(B, T, C, nh, H, itemsize):
    """VMEM-aware default batch block (review: v7x has 64 MiB physical / 32 MiB scoped VMEM)."""
    per_b = (2 * T * C * itemsize          # x block, double-buffered
             + 2 * T * nh * H * 4          # out block (f32), double-buffered
             + T * 3 * nh * H * 4          # fused qkv activations (f32)
             + 2 * T * T * 4)              # score / prob tiles (f32)
    budget = 16 << 20                      # stay well inside the 32 MiB scoped-VMEM default
    bb = max(1, min(B, budget // max(per_b, 1)))
    while B % bb:                          # must evenly divide B
        bb -= 1
    return bb


def multi_head_forward(x, wqs, wks, wvs, *, batch_block=None, compute_dtype=jnp.bfloat16):
    """Fused multi-head causal self-attention; each head matches Head.forward, outputs concatenated.

    batch_block: batch elements per grid step.  Default = whole batch in one step (collapsed grid —
    best on single-TensorCore v5e/v6e), capped so the block stays inside the scoped-VMEM default.
    On v7x pass batch_block = max(1, B // 2) to split across its two TensorCores.
    compute_dtype: MXU input dtype (f32 accumulation).  bf16 by default per review; pass None to
    keep the original dtype end-to-end.
    """
    B, T, C = x.shape
    nh = len(wqs)
    H = wqs[0].shape[1]
    scale = C ** (-0.5)   # PyTorch code scales by C**-0.5 (n_embd), not head_size — keep it.

    in_dtype = compute_dtype if compute_dtype is not None else x.dtype
    if batch_block is None:
        batch_block = _pick_batch_block(B, T, C, nh, H, jnp.dtype(in_dtype).itemsize)
    assert B % batch_block == 0, "batch_block must divide B"

    # Fuse all projection weights into one (C, 3*nh*H) matrix -> one MXU pass in the kernel.
    wqkv = jnp.concatenate(list(wqs) + list(wks) + list(wvs), axis=1)

    x_in = x.astype(in_dtype) if x.dtype != in_dtype else x
    w_in = wqkv.astype(in_dtype) if wqkv.dtype != in_dtype else wqkv

    kernel = functools.partial(_attn_kernel, scale=scale, head_size=H, num_heads=nh)

    return pl.pallas_call(
        kernel,
        out_shape=jax.ShapeDtypeStruct((B, T, nh * H), x.dtype),
        grid_spec=pltpu.PrefetchScalarGridSpec(
            num_scalar_prefetch=0,
            grid=(B // batch_block,),
            in_specs=[
                pl.BlockSpec((batch_block, T, C), lambda b: (b, 0, 0)),   # x block
                pl.BlockSpec((C, 3 * nh * H), lambda b: (0, 0)),          # fused Wqkv (resident)
            ],
            out_specs=pl.BlockSpec((batch_block, T, nh * H), lambda b: (b, 0, 0)),
        ),
        compiler_params=pltpu.CompilerParams(
            dimension_semantics=("parallel",),
        ),
    )(x_in, w_in)


def head_forward(x, wq, wk, wv, **kwargs):
    """Single-head causal self-attention, matching Head.forward semantics exactly (nh = 1)."""
    return multi_head_forward(x, [wq], [wk], [wv], **kwargs)


def _head_reference(x, wq, wk, wv):
    """Pure-JAX f32 reference for one Head (high-precision matmuls)."""
    B, T, C = x.shape
    hp = jax.lax.Precision.HIGHEST
    q = jnp.einsum('btc,ch->bth', x, wq, precision=hp)
    k = jnp.einsum('btc,ch->bth', x, wk, precision=hp)
    v = jnp.einsum('btc,ch->bth', x, wv, precision=hp)
    s = jnp.einsum('bqh,bkh->bqk', q, k, precision=hp) * (C ** -0.5)
    mask = jnp.tril(jnp.ones((T, T), dtype=bool))
    s = jnp.where(mask[None, :, :], s, -jnp.inf)
    p = jax.nn.softmax(s, axis=-1)
    return jnp.einsum('bqk,bkh->bqh', p, v, precision=hp)


if __name__ == "__main__":
    key = jax.random.PRNGKey(0)
    B, T, C = 2, block_size, n_embd   # T == block_size (= 32), C == n_embd (= 64)
    head_size = 16
    n_fused = 8                       # 8 heads * 16 = 128 lanes -> lane-dense output slab

    kx, kw = jax.random.split(key)
    x = jax.random.normal(kx, (B, T, C), dtype=jnp.float32)

    # Deterministic weight init mimicking nn.Linear's uniform(-1/sqrt(C), 1/sqrt(C)).
    bound = 1.0 / (C ** 0.5)
    wkeys = jax.random.split(kw, 3 * n_fused)
    wqs = [jax.random.uniform(wkeys[h], (C, head_size), jnp.float32, -bound, bound)
           for h in range(n_fused)]
    wks = [jax.random.uniform(wkeys[n_fused + h], (C, head_size), jnp.float32, -bound, bound)
           for h in range(n_fused)]
    wvs = [jax.random.uniform(wkeys[2 * n_fused + h], (C, head_size), jnp.float32, -bound, bound)
           for h in range(n_fused)]

    # Tolerance reflects bf16 MXU inputs (f32 accumulation); semantics otherwise identical.
    atol = rtol = 2.5e-2

    # ---- 1) The literal `Head` module (single head, the spec) ----
    out1 = jax.block_until_ready(head_forward(x, wqs[0], wks[0], wvs[0]))
    ref1 = _head_reference(x, wqs[0], wks[0], wvs[0])
    assert out1.shape == (B, T, head_size)
    assert jnp.allclose(out1, ref1, atol=atol, rtol=rtol), "single-head mismatch vs reference"

    # ---- 2) Fused 8-head variant (lane-dense output slab, per performance review) ----
    out8 = jax.block_until_ready(multi_head_forward(x, wqs, wks, wvs))
    ref8 = jnp.concatenate(
        [_head_reference(x, wqs[h], wks[h], wvs[h]) for h in range(n_fused)], axis=-1)
    assert out8.shape == (B, T, n_fused * head_size)
    assert jnp.allclose(out8, ref8, atol=atol, rtol=rtol), "fused multi-head mismatch vs reference"

    print("KERNEL_OK")
</pallas_src>

<mosaic_0001>
module attributes {stable_mosaic.version = 11 : i64} {
  func.func @_attn_kernel(%arg0: i32, %arg1: memref<2x32x64xbf16, #tpu.memory_space<vmem>>, %arg2: memref<64x48xbf16, #tpu.memory_space<vmem>>, %arg3: memref<2x32x16xf32, #tpu.memory_space<vmem>>) attributes {dimension_semantics = [#tpu.dimension_semantics<parallel>], iteration_bounds = array<i64: 1>, scalar_prefetch = 0 : i64, scratch_operands = 0 : i64, tpu.core_type = #tpu.core_type<tc>, window_params = [{transform_indices = @transform_0, window_bounds = array<i64: 2, 32, 64>}, {pipeline_mode = #tpu.pipeline_mode<synchronous>, transform_indices = @transform_1, window_bounds = array<i64: 64, 48>}, {transform_indices = @transform_2, window_bounds = array<i64: 2, 32, 16>}]} {
    %c0 = arith.constant 0 : index
    %c0_0 = arith.constant 0 : index
    %c0_1 = arith.constant 0 : index
    %0 = vector.load %arg1[%c0, %c0_0, %c0_1] : memref<2x32x64xbf16, #tpu.memory_space<vmem>>, vector<2x32x64xbf16>
    %1 = vector.shape_cast %0 : vector<2x32x64xbf16> to vector<64x64xbf16>
    %c0_2 = arith.constant 0 : index
    %c0_3 = arith.constant 0 : index
    %2 = vector.load %arg2[%c0_2, %c0_3] : memref<64x48xbf16, #tpu.memory_space<vmem>>, vector<64x48xbf16>
    %cst = arith.constant dense<0.000000e+00> : vector<64x48xf32>
    %3 = tpu.matmul %1, %2, %cst {dimension_numbers = #tpu.dot_dimension_numbers<[1], [0], [0], [1], [0, 0, 1, 1], [], []>} : vector<64x64xbf16>, vector<64x48xbf16>, vector<64x48xf32> -> vector<64x48xf32>
    %4 = tpu.iota {dimensions = array<i32: 0>} : vector<32x32xi32>
    %5 = tpu.iota {dimensions = array<i32: 1>} : vector<32x32xi32>
    %6 = arith.cmpi sle, %5, %4 : vector<32x32xi32>
    %7 = vector.shape_cast %6 : vector<32x32xi1> to vector<1x32x32xi1>
    %8 = vector.extract_strided_slice %3 {offsets = [0, 0], sizes = [64, 16], strides = [1, 1]} : vector<64x48xf32> to vector<64x16xf32>
    %9 = vector.extract_strided_slice %3 {offsets = [0, 16], sizes = [64, 16], strides = [1, 1]} : vector<64x48xf32> to vector<64x16xf32>
    %10 = vector.extract_strided_slice %3 {offsets = [0, 32], sizes = [64, 16], strides = [1, 1]} : vector<64x48xf32> to vector<64x16xf32>
    %cst_4 = arith.constant 1.250000e-01 : f32
    %11 = vector.broadcast %cst_4 : f32 to vector<64x16xf32>
    %12 = arith.mulf %8, %11 : vector<64x16xf32>
    %13 = arith.truncf %12 : vector<64x16xf32> to vector<64x16xbf16>
    %14 = vector.shape_cast %13 : vector<64x16xbf16> to vector<2x32x16xbf16>
    %15 = arith.truncf %9 : vector<64x16xf32> to vector<64x16xbf16>
    %16 = vector.shape_cast %15 : vector<64x16xbf16> to vector<2x32x16xbf16>
    %17 = arith.truncf %10 : vector<64x16xf32> to vector<64x16xbf16>
    %18 = vector.shape_cast %17 : vector<64x16xbf16> to vector<2x32x16xbf16>
    "tpu.trace_start"() <{level = 10 : i32, message = "bqd,bkd->bqk"}> : () -> ()
    %cst_5 = arith.constant dense<0.000000e+00> : vector<2x32x32xf32>
    %19 = tpu.matmul %14, %16, %cst_5 {dimension_numbers = #tpu.dot_dimension_numbers<[2], [2], [1], [1], [0, 0, 0, 1, 1, 1], [0], [0]>} : vector<2x32x16xbf16>, vector<2x32x16xbf16>, vector<2x32x32xf32> -> vector<2x32x32xf32>
    %cst_6 = arith.constant 0xFF800000 : f32
    "tpu.trace_stop"() : () -> ()
    %20 = vector.shape_cast %7 : vector<1x32x32xi1> to vector<1x32x32xi1>
    %21 = vector.broadcast %20 : vector<1x32x32xi1> to vector<2x32x32xi1>
    %22 = vector.broadcast %cst_6 : f32 to vector<2x32x32xf32>
    %23 = arith.select %21, %19, %22 : vector<2x32x32xi1>, vector<2x32x32xf32>
    %cst_7 = arith.constant dense<0xFF800000> : vector<2x32xf32>
    %24 = vector.multi_reduction <maximumf>, %23, %cst_7 [2] : vector<2x32x32xf32> to vector<2x32xf32>
    %25 = vector.shape_cast %24 : vector<2x32xf32> to vector<2x32x1xf32>
    %26 = vector.broadcast %25 : vector<2x32x1xf32> to vector<2x32x32xf32>
    %27 = arith.subf %23, %26 : vector<2x32x32xf32>
    %28 = math.exp %27 : vector<2x32x32xf32>
    %cst_8 = arith.constant dense<0.000000e+00> : vector<2x32xf32>
    %29 = vector.multi_reduction <add>, %28, %cst_8 [2] : vector<2x32x32xf32> to vector<2x32xf32>
    %30 = vector.shape_cast %29 : vector<2x32xf32> to vector<2x32x1xf32>
    %31 = vector.broadcast %30 : vector<2x32x1xf32> to vector<2x32x32xf32>
    %32 = arith.divf %28, %31 : vector<2x32x32xf32>
    %33 = arith.truncf %32 : vector<2x32x32xf32> to vector<2x32x32xbf16>
    "tpu.trace_start"() <{level = 10 : i32, message = "bqk,bkd->bqd"}> : () -> ()
    %cst_9 = arith.constant dense<0.000000e+00> : vector<2x32x16xf32>
    %34 = tpu.matmul %33, %18, %cst_9 {dimension_numbers = #tpu.dot_dimension_numbers<[2], [1], [1], [2], [0, 0, 0, 1, 1, 2], [0], [0]>} : vector<2x32x32xbf16>, vector<2x32x16xbf16>, vector<2x32x16xf32> -> vector<2x32x16xf32>
    "tpu.trace_stop"() : () -> ()
    %c0_10 = arith.constant 0 : index
    %c0_11 = arith.constant 0 : index
    %c0_12 = arith.constant 0 : index
    %35 = vector.load %arg3[%c0_10, %c0_11, %c0_12] : memref<2x32x16xf32, #tpu.memory_space<vmem>>, vector<2x32x16xf32>
    tpu.vector_store %arg3[%c0_10, %c0_11, %c0_12], %34 {strides = array<i32>} : memref<2x32x16xf32, #tpu.memory_space<vmem>>, vector<2x32x16xf32>,
    return
  }
  func.func @transform_0(%arg0: i32) -> (i32, i32, i32) {
    %c0_i32 = arith.constant 0 : i32
    %c0_i32_0 = arith.constant 0 : i32
    %c0_i32_1 = arith.constant 0 : i32
    return %arg0, %c0_i32, %c0_i32_0 : i32, i32, i32
  }
  func.func @transform_1(%arg0: i32) -> (i32, i32) {
    %c0_i32 = arith.constant 0 : i32
    %c0_i32_0 = arith.constant 0 : i32
    %c0_i32_1 = arith.constant 0 : i32
    return %c0_i32, %c0_i32_0 : i32, i32
  }
  func.func @transform_2(%arg0: i32) -> (i32, i32, i32) {
    %c0_i32 = arith.constant 0 : i32
    %c0_i32_0 = arith.constant 0 : i32
    %c0_i32_1 = arith.constant 0 : i32
    return %arg0, %c0_i32, %c0_i32_0 : i32, i32, i32
  }
}

</mosaic_0001>

<bundles_post_ra>
// kernel: tpu_custom_call.1
= control target key start
LH: loop header
LB: loop body
LE: loop exit
PB: predicated region body
PF: predicated region fallthrough
CT: control target
= control target key end

     0   :  { %vm72_vm0 = vcmask 523264   ;;  %vm183_vm1 = vcmask 130048   ;;  %v150_v40 = vlaneseq  ;;  %vm328_vm3 = vcmask 261120   ;;  %s826_s1 = inlined_call_operand.vmem [shape: bf16[64,48], index: 1, kind: input, shape index: {}]   ;;  %s827_s0 = inlined_call_operand.vmem [shape: bf16[2,32,64], index: 0, kind: input, shape index: {}]   ;;  %s828_s2 = inlined_call_operand.vmem [shape: f32[2,32,16], index: 2, kind: output, shape index: {}]  }
   0x1   :  { %v653_v0 = vld [vmem:[%s826_s1] sm:$0xff]   ;;  %v654_v1 = vld [vmem:[%s826_s1 + $0x8] sm:$0xff]   ;;  %v655_v2 = vld [vmem:[%s826_s1 + $0x10] sm:$0xff]  }
   0x2   :  { %599 = vmatprep.subr.bf16.mxu0 %v653_v0  ;;  %v657_v3 = vld [vmem:[%s827_s0] sm:$0xff]   ;;  %v656_v4 = vld [vmem:[%s826_s1 + $0x18] sm:$0xff]   ;;  %v658_v5 = vld [vmem:[%s827_s0 + $0x8] sm:$0xff]   ;;  %s693_s1 = smov 112   ;;  %v151_v41 = vshrl.u32 %v150_v40, 7  ;;  %v156_v42 = vand.u32 127, %v150_v40 }
   0x3   :  { %600 = vmatpush3.bf16.msra.mxu0 %v653_v0  ;;  %607 = vmatprep.mubr.msk.bf16.mxu0 %vm72_vm0, %v657_v3  ;;  %v659_v6 = vld [vmem:[%s827_s0 + $0x10] sm:$0xff]   ;;  %v660_v7 = vld [vmem:[%s827_s0 + $0x18] sm:$0xff]   ;;  %s694_s0 = smov 96  }
   0x4   :  { %601 = vmatprep.subr.bf16.mxu0 %v654_v1  ;;  %v153_v43 = vadd.s32 16, %v151_v41  ;;  %v152_v44 = vadd.s32 8, %v151_v41  ;;  %vm157_vm2 = vcmp.le.s32.totalorder %v156_v42, %v151_v41  ;;  %v154_v47 = vadd.s32 24, %v151_v41 }
   0x6   :  { %vm159_vm4 = vcmp.le.s32.totalorder %v156_v42, %v153_v43  ;;  %vm158_vm5 = vcmp.le.s32.totalorder %v156_v42, %v152_v44  ;;  %vm160_vm6 = vcmp.le.s32.totalorder %v156_v42, %v154_v47 }
   0x7   :  { %602 = vmatpush3.bf16.msra.mxu0 %v654_v1 }
   0x8   :  { %603 = vmatprep.subr.bf16.mxu0 %v655_v2 }
   0xb   :  { %604 = vmatpush3.bf16.msra.mxu0 %v655_v2 }
   0xc   :  { %605 = vmatprep.subr.bf16.mxu0 %v656_v4 }
   0xf   :  { %606 = vmatpush3.bf16.msra.mxu0 %v656_v4 }
  0x12   :  { %608 = vmatmul.mubr.msk.bf16.vlgmr.msra.gmra.mrb[0].mxu0 %vm72_vm0, %v658_v5 }
  0x13   :  { %611 = vmatprep.mubr.msk.bf16.mxu0 %vm72_vm0, %v659_v6 }
  0x1a   :  { %612 = vmatmul.mubr.msk.bf16.gmra.mrb[4].mxu0 %vm72_vm0, %v660_v7 }
  0xe5   :  { %v609_v8 = vpop.f32.mrb[0].mxu0 }
  0xe6   :  { %v119_v9 = vpop.f32.mrb[1].mxu0  ;;  %v163_v11 = vmul.f32 0.125, %v609_v8 }
  0xe7   :  { %v610_v10 = vpop.f32.mrb[2].mxu0  ;;  %v161_v15 = vmul.f32 0.125, %v119_v9 }
  0xe8   :  { %v164_v12 = vmul.f32 0.125, %v610_v10  ;;  %v734_v13 = vpack.c.bf16 %v610_v10, %v609_v8  ;;  %v122_v14 = vpop.f32.mrb[3].mxu0 }
  0xe9   :  { %v162_v16 = vmul.f32 0.125, %v122_v14  ;;  %v736_v17 = vpack.c.bf16 %v122_v14, %v119_v9 }
  0xea   :  { %v170_v18 = vpack.c.bf16 %v164_v12, %v163_v11 }
  0xeb   :  { %179 = vrot.lane.b32.xlu0 %v736_v17, %s693_s1  ;;  %v169_v19 = vpack.c.bf16 %v162_v16, %v161_v15 }
  0xed   :  { %v613_v20 = vpop.f32.mrb[4].mxu0  ;;  %619 = vmatprep.mubr.msk.bf16.mxu1 %vm183_vm1, %v169_v19 }
  0xee   :  { %v167_v21 = vmul.f32 0.125, %v613_v20  ;;  %v135_v22 = vpop.f32.mrb[5].mxu0 }
  0xef   :  { %v165_v23 = vmul.f32 0.125, %v135_v22  ;;  %181 = vrot.lane.b32.xlu0 %v734_v13, %s693_s1  ;;  %v614_v24 = vpop.f32.mrb[6].mxu0 }
  0xf0   :  { %v168_v25 = vmul.f32 0.125, %v614_v24  ;;  %v741_v26 = vpack.c.bf16 %v614_v24, %v613_v20  ;;  %v138_v27 = vpop.f32.mrb[7].mxu0 }
  0xf1   :  { %v166_v28 = vmul.f32 0.125, %v138_v27  ;;  %v743_v29 = vpack.c.bf16 %v138_v27, %v135_v22 }
  0xf2   :  { %v172_v30 = vpack.c.bf16 %v168_v25, %v167_v21 }
  0xf3   :  { %v171_v31 = vpack.c.bf16 %v166_v28, %v165_v23  ;;  %247 = vrot.lane.b32.xlu1 %v743_v29, %s693_s1 }
  0xf5   :  { %627 = vmatprep.mubr.msk.bf16.mxu0 %vm183_vm1, %v171_v31 }
  0xf7   :  { %249 = vrot.lane.b32.xlu1 %v741_v26, %s693_s1 }
 0x15d   :  { %v180_v32 = vpop.permute.xlu0 %179 }
 0x15e   :  { %647 = vmatprep.subr.msk.bf16.mxu1 %vm183_vm1, %v180_v32  ;;  %v191_v33 = vsel %vm183_vm1, %v180_v32, 0 }
 0x15f   :  { %616 = vmatpush3.bf16.xpose.msra.mxu1 %v191_v33 }
 0x161   :  { %v182_v34 = vpop.permute.xlu0 %181 }
 0x162   :  { %648 = vmatprep.subr.msk.bf16.mxu1 %vm183_vm1, %v182_v34  ;;  %v194_v37 = vsel %vm183_vm1, %v182_v34, 0 }
 0x165   :  { %v248_v35 = vpop.permute.xlu1 %247 }
 0x166   :  { %v258_v36 = vsel %vm183_vm1, %v248_v35, 0  ;;  %649 = vmatprep.subr.msk.bf16.mxu0 %vm183_vm1, %v248_v35 }
 0x167   :  { %618 = vmatpush3.bf16.xpose.msra.mxu1 %v194_v37  ;;  %624 = vmatpush3.bf16.xpose.msra.mxu0 %v258_v36 }
 0x169   :  { %v250_v38 = vpop.permute.xlu1 %249 }
 0x16a   :  { %650 = vmatprep.subr.msk.bf16.mxu0 %vm183_vm1, %v250_v38  ;;  %v261_v39 = vsel %vm183_vm1, %v250_v38, 0 }
 0x16e   :  { %620 = vmatmul.mubr.msk.bf16.vlgmr.msra.gmra.mrb[0].mxu1 %vm183_vm1, %v170_v18 }
 0x16f   :  { %626 = vmatpush3.bf16.xpose.msra.mxu0 %v261_v39 }
 0x176   :  { %628 = vmatmul.mubr.msk.bf16.vlgmr.msra.gmra.mrb[8].mxu0 %vm183_vm1, %v172_v30 }
 0x241   :  { %v621_v45 = vpop.f32.mrb[0].mxu1 }
 0x242   :  { %v230_v46 = vpop.f32.mrb[1].mxu1  ;;  %v322_v52 = vsel %vm159_vm4, %v621_v45, -inf }
 0x243   :  { %v320_v48 = vsel %vm157_vm2, %v230_v46, -inf  ;;  %v622_v49 = vpop.f32.mrb[2].mxu1  ;;  %v335_v55 = vsel %vm328_vm3, %v322_v52, -inf }
 0x244   :  { %v233_v50 = vpop.f32.mrb[3].mxu1  ;;  %v329_v51 = vsel %vm328_vm3, %v320_v48, -inf  ;;  %v323_v56 = vsel %vm160_vm6, %v622_v49, -inf }
 0x245   :  { %v321_v53 = vsel %vm158_vm5, %v233_v50, -inf  ;;  %330 = vmax.xlane.f32.xlu0 %v329_v51  ;;  %v338_v62 = vsel %vm328_vm3, %v323_v56, -inf }
 0x246   :  { %v332_v54 = vsel %vm328_vm3, %v321_v53, -inf }
 0x247   :  { %333 = vmax.xlane.f32.xlu1 %v332_v54 }
 0x249   :  { %336 = vmax.xlane.f32.xlu0 %v335_v55  ;;  %v629_v57 = vpop.f32.mrb[8].mxu0 }
 0x24a   :  { %v297_v58 = vpop.f32.mrb[9].mxu0  ;;  %v326_v0 = vsel %vm159_vm4, %v629_v57, -inf }
 0x24b   :  { %v324_v59 = vsel %vm157_vm2, %v297_v58, -inf  ;;  %v630_v60 = vpop.f32.mrb[10].mxu0  ;;  %v347_v2 = vsel %vm328_vm3, %v326_v0, -inf }
 0x24c   :  { %v300_v61 = vpop.f32.mrb[11].mxu0  ;;  %v341_v63 = vsel %vm328_vm3, %v324_v59, -inf  ;;  %v327_v4 = vsel %vm160_vm6, %v630_v60, -inf }
 0x24d   :  { %v325_v1 = vsel %vm158_vm5, %v300_v61, -inf  ;;  %339 = vmax.xlane.f32.xlu0 %v338_v62  ;;  %342 = vmax.xlane.f32.xlu1 %v341_v63  ;;  %v350_v5 = vsel %vm328_vm3, %v327_v4, -inf }
 0x24e   :  { %v344_v3 = vsel %vm328_vm3, %v325_v1, -inf }
 0x251   :  { %348 = vmax.xlane.f32.xlu1 %v347_v2  ;;  %345 = vmax.xlane.f32.xlu0 %v344_v3 }
 0x255   :  { %351 = vmax.xlane.f32.xlu0 %v350_v5 }
 0x262   :  { %421 = vrot.lane.b32.xlu1 %v736_v17, %s694_s0 }
 0x2d2   :  { %v331_v6 = vpop.xlane.xlu0 %330 }
 0x2d3   :  { %v353_v7 = vsub.f32 %v320_v48, %v331_v6 }
 0x2d4   :  { %v334_v8 = vpop.xlane.xlu1 %333 }
 0x2d5   :  { %v361_v11 = vmul.f32 1.442695, %v353_v7  ;;  %v354_v12 = vsub.f32 %v321_v53, %v334_v8 }
 0x2d6   :  { %v337_v9 = vpop.xlane.xlu0 %336 }
 0x2d7   :  { %v355_v10 = vsub.f32 %v322_v52, %v337_v9  ;;  %v363_v19 = vmul.f32 1.442695, %v354_v12 }
 0x2d9   :  { %v365_v14 = vmul.f32 1.442695, %v355_v10 }
 0x2da   :  { %v340_v15 = vpop.xlane.xlu0 %339  ;;  %v343_v16 = vpop.xlane.xlu1 %342 }
 0x2db   :  { %661 = vpow2.f32 %v365_v14  ;;  %v356_v18 = vsub.f32 %v323_v56, %v340_v15  ;;  %v357_v21 = vsub.f32 %v324_v59, %v343_v16 }
 0x2dc   :  { %663 = vpow2.f32 %v361_v11 }
 0x2dd   :  { %v367_v20 = vmul.f32 1.442695, %v356_v18  ;;  %v369_v24 = vmul.f32 1.442695, %v357_v21 }
 0x2de   :  { %v349_v22 = vpop.xlane.xlu1 %348  ;;  %v346_v23 = vpop.xlane.xlu0 %345 }
 0x2df   :  { %665 = vpow2.f32 %v367_v20  ;;  %v359_v17 = vsub.f32 %v326_v0, %v349_v22  ;;  %v358_v27 = vsub.f32 %v325_v1, %v346_v23 }
 0x2e0   :  { %667 = vpow2.f32 %v363_v19 }
 0x2e1   :  { %v373_v25 = vmul.f32 1.442695, %v359_v17  ;;  %v371_v33 = vmul.f32 1.442695, %v358_v27 }
 0x2e2   :  { %v422_v28 = vpop.permute.xlu1 %421  ;;  %v352_v30 = vpop.xlane.xlu0 %351 }
 0x2e3   :  { %669 = vpow2.f32 %v373_v25  ;;  %v360_v31 = vsub.f32 %v327_v4, %v352_v30  ;;  %631 = vmatprep.subr.bf16.mxu1 %v422_v28 }
 0x2e4   :  { %632 = vmatpush3.bf16.msra.mxu1 %v422_v28  ;;  %671 = vpow2.f32 %v369_v24 }
 0x2e5   :  { %v662_v32 = vpop.eup %661  ;;  %v375_v34 = vmul.f32 1.442695, %v360_v31 }
 0x2e6   :  { %v383_v35 = vsel %vm328_vm3, %v662_v32, 0.0  ;;  %v664_v36 = vpop.eup %663 }
 0x2e7   :  { %673 = vpow2.f32 %v375_v34  ;;  %384 = vadd.xlane.f32.xlu1 %v383_v35  ;;  %v377_v38 = vsel %vm328_vm3, %v664_v36, 0.0 }
 0x2e8   :  { %675 = vpow2.f32 %v371_v33 }
 0x2e9   :  { %v666_v37 = vpop.eup %665 }
 0x2ea   :  { %v386_v39 = vsel %vm328_vm3, %v666_v37, 0.0  ;;  %v668_v40 = vpop.eup %667 }
 0x2eb   :  { %378 = vadd.xlane.f32.xlu1 %v377_v38  ;;  %387 = vadd.xlane.f32.xlu0 %v386_v39  ;;  %v380_v43 = vsel %vm328_vm3, %v668_v40, 0.0 }
 0x2ed   :  { %v670_v41 = vpop.eup %669 }
 0x2ee   :  { %v395_v42 = vsel %vm328_vm3, %v670_v41, 0.0  ;;  %v672_v44 = vpop.eup %671 }
 0x2ef   :  { %396 = vadd.xlane.f32.xlu1 %v395_v42  ;;  %381 = vadd.xlane.f32.xlu0 %v380_v43  ;;  %v389_v46 = vsel %vm328_vm3, %v672_v44, 0.0 }
 0x2f1   :  { %v674_v45 = vpop.eup %673 }
 0x2f2   :  { %v398_v47 = vsel %vm328_vm3, %v674_v45, 0.0  ;;  %v676_v48 = vpop.eup %675 }
 0x2f3   :  { %390 = vadd.xlane.f32.xlu1 %v389_v46  ;;  %399 = vadd.xlane.f32.xlu0 %v398_v47  ;;  %v392_v49 = vsel %vm328_vm3, %v676_v48, 0.0 }
 0x2f7   :  { %393 = vadd.xlane.f32.xlu0 %v392_v49 }
 0x304   :  { %482 = vrot.lane.b32.xlu1 %v743_v29, %s694_s0 }
 0x308   :  { %484 = vrot.lane.b32.xlu1 %v741_v26, %s694_s0 }
 0x30d   :  { %423 = vrot.lane.b32.xlu0 %v734_v13, %s694_s0 }
 0x374   :  { %v385_v50 = vpop.xlane.xlu1 %384 }
 0x378   :  { %v379_v51 = vpop.xlane.xlu1 %378  ;;  %v388_v52 = vpop.xlane.xlu0 %387 }
 0x379   :  { %677 = vrcp.f32 %v388_v52 }
 0x37a   :  { %679 = vrcp.f32 %v379_v51 }
 0x37b   :  { %681 = vrcp.f32 %v385_v50 }
 0x37c   :  { %v397_v53 = vpop.xlane.xlu1 %396  ;;  %v382_v54 = vpop.xlane.xlu0 %381 }
 0x37d   :  { %683 = vrcp.f32 %v382_v54 }
 0x380   :  { %v391_v55 = vpop.xlane.xlu1 %390  ;;  %v400_v56 = vpop.xlane.xlu0 %399 }
 0x381   :  { %685 = vrcp.f32 %v391_v55 }
 0x382   :  { %687 = vrcp.f32 %v400_v56 }
 0x383   :  { %689 = vrcp.f32 %v397_v53  ;;  %v678_v57 = vpop.eup %677 }
 0x384   :  { %v394_v29 = vpop.xlane.xlu0 %393  ;;  %v680_v26 = vpop.eup %679  ;;  %v408_v59 = vmul.f32 %v678_v57, %v666_v37 }
 0x385   :  { %691 = vrcp.f32 %v394_v29  ;;  %v682_v58 = vpop.eup %681  ;;  %v483_v61 = vpop.permute.xlu1 %482  ;;  %v402_v62 = vmul.f32 %v680_v26, %v664_v36 }
 0x386   :  { %v406_v0 = vmul.f32 %v682_v58, %v662_v32 }
 0x387   :  { %v684_v13 = vpop.eup %683 }
 0x388   :  { %v424_v60 = vpop.permute.xlu0 %423  ;;  %v404_v63 = vmul.f32 %v684_v13, %v668_v40  ;;  %v418_v3 = vpack.c.bf16 %v408_v59, %v406_v0 }
 0x389   :  { %633 = vmatprep.subr.bf16.mxu1 %v424_v60  ;;  %v485_v7 = vpop.permute.xlu1 %484 }
 0x38a   :  { %634 = vmatpush3.bf16.msra.mxu1 %v424_v60  ;;  %v417_v1 = vpack.c.bf16 %v404_v63, %v402_v62 }
 0x38b   :  { %639 = vmatprep.subr.bf16.mxu1 %v483_v61  ;;  %v686_v2 = vpop.eup %685 }
 0x38c   :  { %v688_v4 = vpop.eup %687  ;;  %635 = vmatprep.mubr.msk.bf16.mxu1 %vm328_vm3, %v417_v1  ;;  %v410_v9 = vmul.f32 %v686_v2, %v672_v44 }
 0x38d   :  { %v690_v5 = vpop.eup %689  ;;  %636 = vmatmul.mubr.msk.bf16.vlgmr.msra.gmra.mrb[4].mxu1 %vm328_vm3, %v418_v3  ;;  %v416_v8 = vmul.f32 %v688_v4, %v674_v45 }
 0x38e   :  { %640 = vmatpush3.bf16.msra.mxu1 %v483_v61  ;;  %v414_v11 = vmul.f32 %v690_v5, %v670_v41 }
 0x38f   :  { %v692_v6 = vpop.eup %691  ;;  %641 = vmatprep.subr.bf16.mxu1 %v485_v7 }
 0x390   :  { %v412_v10 = vmul.f32 %v692_v6, %v676_v48  ;;  %v420_v14 = vpack.c.bf16 %v416_v8, %v414_v11 }
 0x392   :  { %v419_v12 = vpack.c.bf16 %v412_v10, %v410_v9  ;;  %642 = vmatpush3.bf16.msra.mxu1 %v485_v7 }
 0x394   :  { %643 = vmatprep.mubr.msk.bf16.mxu1 %vm328_vm3, %v419_v12 }
 0x395   :  { %644 = vmatmul.mubr.msk.bf16.vlgmr.msra.gmra.mrb[8].mxu1 %vm328_vm3, %v420_v14 }
 0x460   :  { %v637_v15 = vpop.f32.mrb[4].mxu1 }
 0x461   :  { %545 = vst.msk [vmem:[%s828_s2 + $0x10] sm:$0xff] %vm183_vm1, %v637_v15  ;;  %v467_v16 = vpop.f32.mrb[5].mxu1 }
 0x462   :  { %543 = vst.msk [vmem:[%s828_s2] sm:$0xff] %vm183_vm1, %v467_v16  ;;  %v638_v18 = vpop.f32.mrb[6].mxu1 }
 0x463   :  { %546 = vst.msk [vmem:[%s828_s2 + $0x18] sm:$0xff] %vm183_vm1, %v638_v18  ;;  %v470_v19 = vpop.f32.mrb[7].mxu1 }
 0x464   :  { %544 = vst.msk [vmem:[%s828_s2 + $0x8] sm:$0xff] %vm183_vm1, %v470_v19 }
 0x468   :  { %v645_v20 = vpop.f32.mrb[8].mxu1 }
 0x469   :  { %549 = vst.msk [vmem:[%s828_s2 + $0x30] sm:$0xff] %vm183_vm1, %v645_v20  ;;  %v528_v21 = vpop.f32.mrb[9].mxu1 }
 0x46a   :  { %547 = vst.msk [vmem:[%s828_s2 + $0x20] sm:$0xff] %vm183_vm1, %v528_v21  ;;  %v646_v22 = vpop.f32.mrb[10].mxu1 }
 0x46b   :  { %550 = vst.msk [vmem:[%s828_s2 + $0x38] sm:$0xff] %vm183_vm1, %v646_v22  ;;  %v531_v23 = vpop.f32.mrb[11].mxu1 }
 0x46c   :  { %548 = vst.msk [vmem:[%s828_s2 + $0x28] sm:$0xff] %vm183_vm1, %v531_v23 }

</bundles_post_ra>
